<compile_context>
chip_gen: v7x
topology: tpu7x:2x2x1
jax: 0.10.0
libtpu: 0.0.40
codegen_flags: <defaults>
</compile_context>

<pallas_src>
import functools
import math

import jax
import jax.numpy as jnp
from jax.experimental import pallas as pl
from jax.experimental.pallas import tpu as pltpu

_VMEM_LIMIT = 32 * 1024 * 1024


# ----------------------------------------------------------------------------
# Weight preparation helpers (hoisted to __init__).
# Gate order is torch's (i, f, g, o); fused layout interleaves fwd/bwd per
# gate: columns = [i_f | i_b | f_f | f_b | g_f | g_b | o_f | o_b], each H wide,
# so every activation slice in the recurrence is a 2H-wide (>=128-lane) block.
# ----------------------------------------------------------------------------
def _interleave_gate_cols(wf, wb):
    """wf, wb: [K, 4H]  ->  [K, 8H] with per-gate fwd/bwd interleaved columns."""
    K, G = wf.shape
    H = G // 4
    return jnp.stack([wf.reshape(K, 4, H), wb.reshape(K, 4, H)],
                     axis=2).reshape(K, 8 * H)


def _interleave_gate_vec(bf, bb):
    H = bf.shape[0] // 4
    return jnp.stack([bf.reshape(4, H), bb.reshape(4, H)], axis=1).reshape(8 * H)


# ----------------------------------------------------------------------------
# Kernel 1: row-tiled  y = x @ w + b          (bf16 operands, f32 accumulate)
# Kernel 2: row-tiled  y = x1 @ w1 + x2 @ w2 + b   (split-input linear; lets the
#           bi-LSTM's two H-wide outputs be consumed without any concatenate)
# ----------------------------------------------------------------------------
def _linear1_kernel(x_ref, w_ref, b_ref, o_ref):
    acc = jnp.dot(x_ref[...].astype(jnp.bfloat16), w_ref[...],
                  preferred_element_type=jnp.float32)
    o_ref[...] = (acc + b_ref[...]).astype(o_ref.dtype)


def _linear2_kernel(x1_ref, w1_ref, x2_ref, w2_ref, b_ref, o_ref):
    acc = jnp.dot(x1_ref[...].astype(jnp.bfloat16), w1_ref[...],
                  preferred_element_type=jnp.float32)
    acc = acc + jnp.dot(x2_ref[...].astype(jnp.bfloat16), w2_ref[...],
                        preferred_element_type=jnp.float32)
    o_ref[...] = (acc + b_ref[...]).astype(o_ref.dtype)


def _pad_rows(a, rp):
    r = a.shape[0]
    if rp == r:
        return a
    return jnp.zeros((rp,) + a.shape[1:], a.dtype).at[:r].set(a)


def linear1_pallas(x, w, b, *, out_dtype=jnp.float32, tm=128):
    """x: [R, K], w: [K, N] bf16 (prepared), b: [1, N] f32 -> [R, N]."""
    R, K = x.shape
    N = w.shape[1]
    Rp = -(-R // tm) * tm
    x = _pad_rows(x, Rp)
    out = pl.pallas_call(
        _linear1_kernel,
        out_shape=jax.ShapeDtypeStruct((Rp, N), out_dtype),
        grid=(Rp // tm,),
        in_specs=[
            pl.BlockSpec((tm, K), lambda i: (i, 0)),
            pl.BlockSpec((K, N), lambda i: (0, 0)),
            pl.BlockSpec((1, N), lambda i: (0, 0)),
        ],
        out_specs=pl.BlockSpec((tm, N), lambda i: (i, 0)),
        compiler_params=pltpu.CompilerParams(
            dimension_semantics=("parallel",),
            vmem_limit_bytes=_VMEM_LIMIT),
    )(x, w, b)
    return out[:R]


def linear2_pallas(x1, w1, x2, w2, b, *, out_dtype=jnp.float32, tm=128):
    R, K1 = x1.shape
    K2 = x2.shape[1]
    N = w1.shape[1]
    Rp = -(-R // tm) * tm
    x1 = _pad_rows(x1, Rp)
    x2 = _pad_rows(x2, Rp)
    out = pl.pallas_call(
        _linear2_kernel,
        out_shape=jax.ShapeDtypeStruct((Rp, N), out_dtype),
        grid=(Rp // tm,),
        in_specs=[
            pl.BlockSpec((tm, K1), lambda i: (i, 0)),
            pl.BlockSpec((K1, N), lambda i: (0, 0)),
            pl.BlockSpec((tm, K2), lambda i: (i, 0)),
            pl.BlockSpec((K2, N), lambda i: (0, 0)),
            pl.BlockSpec((1, N), lambda i: (0, 0)),
        ],
        out_specs=pl.BlockSpec((tm, N), lambda i: (i, 0)),
        compiler_params=pltpu.CompilerParams(
            dimension_semantics=("parallel",),
            vmem_limit_bytes=_VMEM_LIMIT),
    )(x1, w1, x2, w2, b)
    return out[:R]


# ----------------------------------------------------------------------------
# Kernel 3: fused bidirectional LSTM recurrence, one layer, both directions.
#   grid over time CHUNKS (sequential, "arbitrary"); inner unrolled fori_loop
#   over the Tc steps of the chunk; single [B,2H] h/c state in VMEM scratch;
#   one block-diagonal [2H,8H] recurrent matmul per step.
#   Backward direction uses a time-flipped view of the SAME gate-input array
#   (reversed BlockSpec index_map) and a valid-mask-gated carry, which
#   reproduces pack_padded_sequence semantics without any HBM gathers.
# ----------------------------------------------------------------------------
def _bilstm_kernel(xgf_ref, xgr_ref, vf_ref, vr_ref, whh_ref,
                   of_ref, ob_ref, h_sc, c_sc, *, hidden, tc):
    H = hidden

    @pl.when(pl.program_id(0) == 0)
    def _():
        h_sc[...] = jnp.zeros_like(h_sc)
        c_sc[...] = jnp.zeros_like(c_sc)

    # Constant column masks (hoisted out of the hot loop).
    col8 = jax.lax.broadcasted_iota(jnp.int32, (1, 8 * H), 1)
    is_fwd_gate_col = ((col8 // H) % 2) == 0          # even H-blocks: fwd gates
    col2 = jax.lax.broadcasted_iota(jnp.int32, (1, 2 * H), 1)
    is_fwd_state_col = col2 < H                       # state layout [h_f | h_b]

    def step(s, carry):
        h, c = carry
        # fwd gate inputs of token t = tb*Tc + s ; bwd gate inputs of T-1-t.
        xf = xgf_ref[s]
        xb = xgr_ref[tc - 1 - s]
        xg = jnp.where(is_fwd_gate_col, xf, xb).astype(jnp.float32)   # [B, 8H]
        gates = xg + jnp.dot(h.astype(whh_ref.dtype), whh_ref[...],
                             preferred_element_type=jnp.float32)
        i2 = jax.nn.sigmoid(gates[:, 0:2 * H])          # [i_f | i_b]
        f2 = jax.nn.sigmoid(gates[:, 2 * H:4 * H])      # [f_f | f_b]
        g2 = jnp.tanh(gates[:, 4 * H:6 * H])            # [g_f | g_b]
        o2 = jax.nn.sigmoid(gates[:, 6 * H:8 * H])      # [o_f | o_b]
        c_new = f2 * c + i2 * g2
        h_new = o2 * jnp.tanh(c_new)

        mf = vf_ref[s]                                  # [B, 1] 1./0.
        mb = vr_ref[tc - 1 - s]                         # [B, 1]
        m2 = jnp.where(is_fwd_state_col, mf, mb) > 0.5  # [B, 2H]
        # Mask-gated carry: padded steps are no-ops (packed-sequence semantics;
        # required for the backward direction, harmless for the forward one).
        c = jnp.where(m2, c_new, c)
        h = jnp.where(m2, h_new, h)

        # pad_packed_sequence semantics: padded positions emit exact zeros.
        of_ref[s] = (h_new[:, :H] * mf).astype(of_ref.dtype)
        ob_ref[tc - 1 - s] = (h_new[:, H:] * mb).astype(ob_ref.dtype)
        return (h, c)

    h, c = jax.lax.fori_loop(0, tc, step, (h_sc[...], c_sc[...]), unroll=True)
    h_sc[...] = h
    c_sc[...] = c


def bilstm_pallas(xg, valid, whh_fused, hidden, tc):
    """xg: [Tp, B, 8H] bf16 (interleaved gate columns), valid: [Tp, B, 1] f32,
    whh_fused: [2H, 8H] bf16 block-diagonal.  Returns (out_f, out_b), each
    [Tp, B, H] bf16 in forward time order, already masked at padded steps."""
    Tp, B, G = xg.shape
    H = hidden
    nT = Tp // tc
    kernel = functools.partial(_bilstm_kernel, hidden=H, tc=tc)
    fwd3 = lambda i: (i, 0, 0)
    rev3 = lambda i: (nT - 1 - i, 0, 0)
    return pl.pallas_call(
        kernel,
        out_shape=(jax.ShapeDtypeStruct((Tp, B, H), jnp.bfloat16),
                   jax.ShapeDtypeStruct((Tp, B, H), jnp.bfloat16)),
        grid=(nT,),
        in_specs=[
            pl.BlockSpec((tc, B, G), fwd3),           # xg, forward chunk
            pl.BlockSpec((tc, B, G), rev3),           # xg, mirrored chunk
            pl.BlockSpec((tc, B, 1), fwd3),           # valid, forward chunk
            pl.BlockSpec((tc, B, 1), rev3),           # valid, mirrored chunk
            pl.BlockSpec((2 * H, G), lambda i: (0, 0)),
        ],
        out_specs=(pl.BlockSpec((tc, B, H), fwd3),
                   pl.BlockSpec((tc, B, H), rev3)),
        scratch_shapes=[pltpu.VMEM((B, 2 * H), jnp.float32),
                        pltpu.VMEM((B, 2 * H), jnp.float32)],
        compiler_params=pltpu.CompilerParams(
            dimension_semantics=("arbitrary",),
            vmem_limit_bytes=_VMEM_LIMIT),
    )(xg, xg, valid, valid, whh_fused)


# ----------------------------------------------------------------------------
# Kernel 4: fused question head  y = tanh(mlp1(mlp([xf|xb]))) * mask
# ----------------------------------------------------------------------------
def _head_q_kernel(xf_ref, w0a_ref, xb_ref, w0b_ref, b0_ref,
                   w1_ref, b1_ref, m_ref, o_ref):
    y = jnp.dot(xf_ref[...].astype(jnp.bfloat16), w0a_ref[...],
                preferred_element_type=jnp.float32)
    y = y + jnp.dot(xb_ref[...].astype(jnp.bfloat16), w0b_ref[...],
                    preferred_element_type=jnp.float32)
    y = y + b0_ref[...]
    y = jnp.tanh(jnp.dot(y.astype(w1_ref.dtype), w1_ref[...],
                         preferred_element_type=jnp.float32) + b1_ref[...])
    o_ref[...] = (y * m_ref[...]).astype(o_ref.dtype)


def head_q_pallas(xf, xb, w0a, w0b, b0, w1, b1, mask, *, tm=128):
    R, H = xf.shape
    N = w0a.shape[1]
    Rp = -(-R // tm) * tm
    xf = _pad_rows(xf, Rp)
    xb = _pad_rows(xb, Rp)
    mask = _pad_rows(mask, Rp)
    out = pl.pallas_call(
        _head_q_kernel,
        out_shape=jax.ShapeDtypeStruct((Rp, N), jnp.float32),
        grid=(Rp // tm,),
        in_specs=[
            pl.BlockSpec((tm, H), lambda i: (i, 0)),
            pl.BlockSpec((H, N), lambda i: (0, 0)),
            pl.BlockSpec((tm, H), lambda i: (i, 0)),
            pl.BlockSpec((H, N), lambda i: (0, 0)),
            pl.BlockSpec((1, N), lambda i: (0, 0)),
            pl.BlockSpec((N, N), lambda i: (0, 0)),
            pl.BlockSpec((1, N), lambda i: (0, 0)),
            pl.BlockSpec((tm, 1), lambda i: (i, 0)),
        ],
        out_specs=pl.BlockSpec((tm, N), lambda i: (i, 0)),
        compiler_params=pltpu.CompilerParams(
            dimension_semantics=("parallel",),
            vmem_limit_bytes=_VMEM_LIMIT),
    )(xf, w0a, xb, w0b, b0, w1, b1, mask)
    return out[:R]


# ----------------------------------------------------------------------------
# Pure-JAX reference (same dtype round-trips, original per-direction weights,
# standard LSTM equations) used to validate the fused/interleaved kernels.
# ----------------------------------------------------------------------------
def _mm_ref(a, w, b=None):
    y = jnp.dot(a.astype(jnp.bfloat16), w.astype(jnp.bfloat16),
                preferred_element_type=jnp.float32)
    if b is not None:
        y = y + b.reshape(1, -1).astype(jnp.float32)
    return y


def _bilstm_layer_ref(xg_f, xg_b, valid, whh_f, whh_b, H):
    Tp, B, _ = xg_f.shape
    wf16 = whh_f.astype(jnp.bfloat16)
    wb16 = whh_b.astype(jnp.bfloat16)

    def cell(h, c, g_in, w16, m):
        gates = g_in + jnp.dot(h.astype(jnp.bfloat16), w16,
                               preferred_element_type=jnp.float32)
        i, f, g, o = jnp.split(gates, 4, axis=-1)
        c_new = jax.nn.sigmoid(f) * c + jax.nn.sigmoid(i) * jnp.tanh(g)
        h_new = jax.nn.sigmoid(o) * jnp.tanh(c_new)
        h = jnp.where(m > 0.5, h_new, h)
        c = jnp.where(m > 0.5, c_new, c)
        return h, c, h_new * m

    def fwd_step(carry, xs):
        h, c = carry
        h, c, out = cell(h, c, xs[0], wf16, xs[1])
        return (h, c), out

    def bwd_step(carry, xs):
        h, c = carry
        h, c, out = cell(h, c, xs[0], wb16, xs[1])
        return (h, c), out

    z = jnp.zeros((B, H), jnp.float32)
    _, out_f = jax.lax.scan(fwd_step, (z, z), (xg_f, valid))
    _, out_b_rev = jax.lax.scan(bwd_step, (z, z), (xg_b[::-1], valid[::-1]))
    return out_f, out_b_rev[::-1]


# ----------------------------------------------------------------------------
# Encoder module (JAX/Pallas port of the PyTorch Encoder).
# ----------------------------------------------------------------------------
class PallasEncoder:
    def __init__(self, hidden_dim, embedding_matrix, train_word_embeddings,
                 dropout, number_of_layers, key, time_chunk=8):
        self.hidden_dim = hidden_dim
        self.embedding = jnp.asarray(embedding_matrix, jnp.float32)
        self.word_embedding_dim = self.embedding.shape[1]
        self.train_word_embeddings = train_word_embeddings
        self.dropout_fraction = dropout
        self.layers = number_of_layers
        self.time_chunk = time_chunk

        H = hidden_dim
        E = self.word_embedding_dim
        ks = iter(jax.random.split(key, 8 * number_of_layers + 4))

        def unif(k, shape, bound):
            return jax.random.uniform(k, shape, jnp.float32, -bound, bound)

        lstm_bound = 1.0 / math.sqrt(H)
        self.lstm_raw = []
        self.lstm_prep = []
        for layer in range(number_of_layers):
            din = E if layer == 0 else 2 * H
            raw = {}
            for d in ("f", "b"):
                # torch stores weight_ih as [4H, din]; we keep the [din, 4H]
                # transpose (gate order i, f, g, o).  b_ih + b_hh folded.
                raw["w_ih_" + d] = unif(next(ks), (din, 4 * H), lstm_bound)
                raw["w_hh_" + d] = unif(next(ks), (H, 4 * H), lstm_bound)
                raw["b_" + d] = (unif(next(ks), (4 * H,), lstm_bound)
                                 + unif(next(ks), (4 * H,), lstm_bound))
            self.lstm_raw.append(raw)

            # Prepared (fused + interleaved + bf16) weights for the kernels.
            z = jnp.zeros((H, 4 * H), jnp.float32)
            whh = jnp.concatenate(
                [_interleave_gate_cols(raw["w_hh_f"], z),
                 _interleave_gate_cols(z, raw["w_hh_b"])], axis=0)   # [2H, 8H]
            prep = {
                "w_hh": whh.astype(jnp.bfloat16),
                "b": _interleave_gate_vec(raw["b_f"], raw["b_b"])
                      .reshape(1, 8 * H).astype(jnp.float32),
            }
            wih = _interleave_gate_cols(raw["w_ih_f"], raw["w_ih_b"])  # [din,8H]
            if layer == 0:
                prep["w_ih"] = wih.astype(jnp.bfloat16)
            else:
                prep["w_ih_top"] = wih[:H].astype(jnp.bfloat16)   # multiplies h_f
                prep["w_ih_bot"] = wih[H:].astype(jnp.bfloat16)   # multiplies h_b
            self.lstm_prep.append(prep)

        mlp_bound = 1.0 / math.sqrt(2 * H)
        self.w_mlp = unif(next(ks), (2 * H, 2 * H), mlp_bound)
        self.b_mlp = unif(next(ks), (2 * H,), mlp_bound)
        self.w_mlp1 = unif(next(ks), (2 * H, 2 * H), mlp_bound)
        self.b_mlp1 = unif(next(ks), (2 * H,), mlp_bound)
        self.head_prep = {
            "wm_top": self.w_mlp[:H].astype(jnp.bfloat16),
            "wm_bot": self.w_mlp[H:].astype(jnp.bfloat16),
            "bm": self.b_mlp.reshape(1, -1).astype(jnp.float32),
            "wm1": self.w_mlp1.astype(jnp.bfloat16),
            "bm1": self.b_mlp1.reshape(1, -1).astype(jnp.float32),
        }

    # -------------------------------------------------------------- forward --
    def __call__(self, max_text_length, batch_sentences, batch_lengths,
                 batch_size, apply_batch_norm=False, istraining=False,
                 isquestion=False, use_pallas=True):
        B, T = batch_size, max_text_length
        tc = max(1, min(self.time_chunk, T))
        Tp = -(-T // tc) * tc

        # torch's sort_sents + the final unsort-scatter cancel; skipped.
        tok = jnp.transpose(batch_sentences)                 # [T, B] time-major
        x = jnp.take(self.embedding, tok, axis=0)            # [T, B, E]
        # TODO(synk): training-mode dropout on embeddings not implemented.
        if Tp != T:
            x = jnp.zeros((Tp, B, x.shape[-1]), x.dtype).at[:T].set(x)
        lens = batch_lengths.astype(jnp.int32)
        valid = (jnp.arange(Tp)[:, None] < lens[None, :]).astype(jnp.float32)
        valid = valid[..., None]                              # [Tp, B, 1]

        # TODO(synk): BatchNorm1d (istraining & apply_batch_norm) not implemented.
        if use_pallas:
            out = self._forward_pallas(x, valid, Tp, B, tc, isquestion)
        else:
            out = self._forward_ref(x, valid, Tp, B, isquestion)
        # Single layout change in the whole stack: time-major -> batch-first.
        return jnp.transpose(out[:T], (1, 0, 2))              # [B, T, 2H]

    def _forward_pallas(self, x, valid, Tp, B, tc, isquestion):
        H = self.hidden_dim
        rows = Tp * B
        of = ob = None
        for layer in range(self.layers):
            prep = self.lstm_prep[layer]
            if layer == 0:
                xg = linear1_pallas(x.reshape(rows, -1), prep["w_ih"],
                                    prep["b"], out_dtype=jnp.bfloat16)
            else:
                xg = linear2_pallas(of.reshape(rows, H), prep["w_ih_top"],
                                    ob.reshape(rows, H), prep["w_ih_bot"],
                                    prep["b"], out_dtype=jnp.bfloat16)
            xg = xg.reshape(Tp, B, 8 * H)
            of, ob = bilstm_pallas(xg, valid, prep["w_hh"], H, tc)
            # TODO(synk): inter-layer LSTM dropout (training only) skipped.
        hp = self.head_prep
        xf = of.reshape(rows, H)
        xb = ob.reshape(rows, H)
        if isquestion:
            # TODO(synk): get_ones_and_zeros_mat helper is not provided; use a
            # 1/0 valid-position mask broadcast over the feature dimension.
            out = head_q_pallas(xf, xb, hp["wm_top"], hp["wm_bot"], hp["bm"],
                                hp["wm1"], hp["bm1"], valid.reshape(rows, 1))
        else:
            out = linear2_pallas(xf, hp["wm_top"], xb, hp["wm_bot"], hp["bm"],
                                 out_dtype=jnp.float32)
            # TODO(synk): training-mode dropout after mlp not implemented.
        return out.reshape(Tp, B, 2 * H)

    def _forward_ref(self, x, valid, Tp, B, isquestion):
        H = self.hidden_dim
        rows = Tp * B
        h_in = x
        for layer in range(self.layers):
            raw = self.lstm_raw[layer]
            flat = h_in.reshape(rows, -1)
            xg_f = _mm_ref(flat, raw["w_ih_f"], raw["b_f"])
            xg_b = _mm_ref(flat, raw["w_ih_b"], raw["b_b"])
            xg_f = xg_f.astype(jnp.bfloat16).astype(jnp.float32)
            xg_b = xg_b.astype(jnp.bfloat16).astype(jnp.float32)
            of, ob = _bilstm_layer_ref(xg_f.reshape(Tp, B, 4 * H),
                                       xg_b.reshape(Tp, B, 4 * H),
                                       valid, raw["w_hh_f"], raw["w_hh_b"], H)
            h_in = jnp.concatenate([of.astype(jnp.bfloat16),
                                    ob.astype(jnp.bfloat16)], axis=-1)
        flat = h_in.reshape(rows, 2 * H)
        if isquestion:
            y = _mm_ref(flat, self.w_mlp, self.b_mlp)
            y = jnp.tanh(_mm_ref(y, self.w_mlp1, self.b_mlp1))
            out = y * valid.reshape(rows, 1)
        else:
            out = _mm_ref(flat, self.w_mlp, self.b_mlp)
        return out.reshape(Tp, B, 2 * H)


if __name__ == "__main__":
    # Small demo shapes: B=2, T=16, vocab=50, embedding_dim=128, hidden=64,
    # 2 LSTM layers -> 2H = 128 lanes, fused gate projection N = 8H = 512 lanes,
    # time chunk Tc=8 -> recurrence grid of 2 chunks.
    B, T, V, E, H, L = 2, 16, 50, 128, 64, 2

    root = jax.random.PRNGKey(0)
    k_emb, k_par, k_tok = jax.random.split(root, 3)

    embedding_matrix = jax.random.normal(k_emb, (V, E), jnp.float32) * 0.5
    encoder = PallasEncoder(hidden_dim=H, embedding_matrix=embedding_matrix,
                            train_word_embeddings=False, dropout=0.1,
                            number_of_layers=L, key=k_par, time_chunk=8)

    batch_sentences = jax.random.randint(k_tok, (B, T), 0, V)
    batch_lengths = jnp.array([T, 11], jnp.int32)

    outs = []
    for isq in (True, False):
        got = encoder(T, batch_sentences, batch_lengths, B,
                      apply_batch_norm=False, istraining=False,
                      isquestion=isq, use_pallas=True)
        want = encoder(T, batch_sentences, batch_lengths, B,
                       apply_batch_norm=False, istraining=False,
                       isquestion=isq, use_pallas=False)
        jax.block_until_ready((got, want))
        assert got.shape == (B, T, 2 * H)
        assert bool(jnp.all(jnp.isfinite(got)))
        assert jnp.allclose(got, want, atol=2e-2, rtol=2e-2), (
            f"Pallas/JAX mismatch (isquestion={isq}): "
            f"max abs err {float(jnp.max(jnp.abs(got - want)))}")
        outs.append(got)

    # Question path: padded positions must be exactly zeroed by the mask.
    assert bool(jnp.all(outs[0][1, 11:, :] == 0.0))

    print("KERNEL_OK")
</pallas_src>

<mosaic_0001>
module attributes {stable_mosaic.version = 11 : i64} {
  func.func @_linear1_kernel(%arg0: i32, %arg1: memref<128x128xf32, #tpu.memory_space<vmem>>, %arg2: memref<128x512xbf16, #tpu.memory_space<vmem>>, %arg3: memref<1x512xf32, #tpu.memory_space<vmem>>, %arg4: memref<128x512xbf16, #tpu.memory_space<vmem>>) attributes {dimension_semantics = [#tpu.dimension_semantics<parallel>], iteration_bounds = array<i64: 1>, scalar_prefetch = 0 : i64, scratch_operands = 0 : i64, tpu.core_type = #tpu.core_type<tc>, window_params = [{transform_indices = @transform_0, window_bounds = array<i64: 128, 128>}, {pipeline_mode = #tpu.pipeline_mode<synchronous>, transform_indices = @transform_1, window_bounds = array<i64: 128, 512>}, {pipeline_mode = #tpu.pipeline_mode<synchronous>, transform_indices = @transform_2, window_bounds = array<i64: 1, 512>}, {transform_indices = @transform_3, window_bounds = array<i64: 128, 512>}]} {
    %c0 = arith.constant 0 : index
    %c0_0 = arith.constant 0 : index
    %0 = vector.load %arg1[%c0, %c0_0] : memref<128x128xf32, #tpu.memory_space<vmem>>, vector<128x128xf32>
    %1 = arith.truncf %0 : vector<128x128xf32> to vector<128x128xbf16>
    %c0_1 = arith.constant 0 : index
    %c0_2 = arith.constant 0 : index
    %2 = vector.load %arg2[%c0_1, %c0_2] : memref<128x512xbf16, #tpu.memory_space<vmem>>, vector<128x512xbf16>
    %cst = arith.constant dense<0.000000e+00> : vector<128x512xf32>
    %3 = tpu.matmul %1, %2, %cst {dimension_numbers = #tpu.dot_dimension_numbers<[1], [0], [0], [1], [0, 0, 1, 1], [], []>} : vector<128x128xbf16>, vector<128x512xbf16>, vector<128x512xf32> -> vector<128x512xf32>
    %c0_3 = arith.constant 0 : index
    %c0_4 = arith.constant 0 : index
    %4 = vector.load %arg3[%c0_3, %c0_4] : memref<1x512xf32, #tpu.memory_space<vmem>>, vector<1x512xf32>
    %5 = vector.broadcast %4 : vector<1x512xf32> to vector<128x512xf32>
    %6 = arith.addf %3, %5 : vector<128x512xf32>
    %7 = arith.truncf %6 : vector<128x512xf32> to vector<128x512xbf16>
    %c0_5 = arith.constant 0 : index
    %c0_6 = arith.constant 0 : index
    %8 = vector.load %arg4[%c0_5, %c0_6] : memref<128x512xbf16, #tpu.memory_space<vmem>>, vector<128x512xbf16>
    tpu.vector_store %arg4[%c0_5, %c0_6], %7 {strides = array<i32>} : memref<128x512xbf16, #tpu.memory_space<vmem>>, vector<128x512xbf16>,
    return
  }
  func.func @transform_0(%arg0: i32) -> (i32, i32) {
    %c0_i32 = arith.constant 0 : i32
    %c0_i32_0 = arith.constant 0 : i32
    return %arg0, %c0_i32 : i32, i32
  }
  func.func @transform_1(%arg0: i32) -> (i32, i32) {
    %c0_i32 = arith.constant 0 : i32
    %c0_i32_0 = arith.constant 0 : i32
    %c0_i32_1 = arith.constant 0 : i32
    return %c0_i32, %c0_i32_0 : i32, i32
  }
  func.func @transform_2(%arg0: i32) -> (i32, i32) {
    %c0_i32 = arith.constant 0 : i32
    %c0_i32_0 = arith.constant 0 : i32
    %c0_i32_1 = arith.constant 0 : i32
    return %c0_i32, %c0_i32_0 : i32, i32
  }
  func.func @transform_3(%arg0: i32) -> (i32, i32) {
    %c0_i32 = arith.constant 0 : i32
    %c0_i32_0 = arith.constant 0 : i32
    return %arg0, %c0_i32 : i32, i32
  }
}

</mosaic_0001>

<bundles_post_ra>
// kernel: tpu_custom_call.1
= control target key start
LH: loop header
LB: loop body
LE: loop exit
PB: predicated region body
PF: predicated region fallthrough
CT: control target
= control target key end

     0   :  { %8 = vsyncpa [#allocation3], 0  ;;  %s1135_s0 = inlined_call_operand.hbm [shape: f32[128,128], index: 0, kind: input, shape index: {}]   ;;  %s1136_s1 = inlined_call_operand.hbm [shape: bf16[128,512], index: 1, kind: input, shape index: {}]   ;;  %s1137_s2 = inlined_call_operand.vmem [shape: f32[1,512], index: 2, kind: input, shape index: {}]   ;;  %s1138_s3 = inlined_call_operand.hbm [shape: bf16[128,512], index: 3, kind: output, shape index: {}]  }
   0x1   :  { %9 = vsyncpa [#allocation6], 0 }
   0x2   :  { %10 = vsyncpa [#allocation4], 0  ;;  %s974_s12 = smov [#allocation2]   ;;  %s902_s16 = scalar_lea.hbm %s1135_s0, 2048 }
   0x3   :  { %s16_s13 = sshll.u32 %s974_s12, 4  ;;  %p903_p0 = scmp.ne.s32.totalorder %s1135_s0, %s902_s16  ;;  %s17_s13 = int_to_ptr.vmem [resolvable:$true] %s16_s13 }
   0x4   :  { %p906_p1 = scmp.lt.u32.totalorder %s902_s16, %s1135_s0 }
   0x6   :  { %p908_p2 = pnand %p906_p1, %p903_p0 }
   0x8   :  { %911 = shalt.err (!%p908_p2)
}
   0x9   :  { %s912_s21 = scalar_lea.vmem %s17_s13, 2048  ;;  %p917_p4 = scmp.lt.s32.totalorder %s17_s13, %s17_s13 }
   0xa   :  { %p913_p3 = scmp.ne.s32.totalorder %s17_s13, %s912_s21  ;;  %p918_p5 = scmp.lt.s32.totalorder %s912_s21, %s912_s21 }
   0xc   :  { %p919_p6 = por %p918_p5, %p917_p4 }
   0xe   :  { %p920_p7 = pnand %p919_p6, %p913_p3 }
  0x10   :  { %923 = shalt.err (!%p920_p7)
}
  0x11   :  { %s975_s22 = smov 128   ;;  %s976_s23 = smov 8  }
  0x12   :  { %22 = dma.hbm_to_vmem [thread:$0]  %s1135_s0, 2048, %s17_s13, [#allocation3], %s975_s22, %s975_s22, %s976_s23  }
  0x13   :  { %s977_s26 = smov [#allocation5]   ;;  %s924_s30 = scalar_lea.hbm %s1136_s1, 4096 }
  0x14   :  { %s28_s27 = sshll.u32 %s977_s26, 4  ;;  %p925_p8 = scmp.ne.s32.totalorder %s1136_s1, %s924_s30  ;;  %s29_s27 = int_to_ptr.vmem [resolvable:$true] %s28_s27 }
  0x15   :  { %p928_p9 = scmp.lt.u32.totalorder %s924_s30, %s1136_s1 }
  0x17   :  { %p930_p10 = pnand %p928_p9, %p925_p8 }
  0x19   :  { %933 = shalt.err (!%p930_p10)
}
  0x1a   :  { %s934_s8 = scalar_lea.vmem %s29_s27, 4096  ;;  %p939_p12 = scmp.lt.s32.totalorder %s29_s27, %s29_s27 }
  0x1b   :  { %p935_p11 = scmp.ne.s32.totalorder %s29_s27, %s934_s8  ;;  %p940_p13 = scmp.lt.s32.totalorder %s934_s8, %s934_s8 }
  0x1d   :  { %p941_p0 = por %p940_p13, %p939_p12 }
  0x1f   :  { %p942_p1 = pnand %p941_p0, %p935_p11 }
  0x21   :  { %945 = shalt.err (!%p942_p1)
}
  0x22   :  { %s978_s0 = smov 256   ;;  %s979_s9 = smov 16  }
  0x23   :  { %34 = dma.hbm_to_vmem [thread:$0]  %s1136_s1, 4096, %s29_s27, [#allocation6], %s978_s0, %s978_s0, %s979_s9  }
  0x24   :  { %968 = dma.done.wait [#allocation3], 2048  }
  0x25   :  { %969 = vsyncadd [#allocation3], 4294965248 }
  0x26   :  { %970 = dma.done.wait [#allocation6], 4096  }
  0x27   :  { %971 = vsyncadd [#allocation6], 4294963200  ;;  %v980_v0 = vmov 0   ;;  %v854_v1 = vld [vmem:[#allocation5 + $0x4] ss:$16 sps:$4 sm:$0xff]   ;;  %v45_v34 = vld [vmem:[#allocation2 + $0x8] sm:$0xff]  ;;  %v102_v57 = vlaneseq }
  0x28   :  { %314 = vmatprep.mubr.bf16.mxu0 %v980_v0  ;;  %427 = vmatprep.mubr.bf16.mxu1 %v980_v0  ;;  %v856_v2 = vld [vmem:[#allocation5 + $0xc] ss:$16 sps:$4 sm:$0xff]   ;;  %v858_v3 = vld [vmem:[#allocation5] ss:$16 sps:$4 sm:$0xff]   ;;  %v859_v4 = vld [vmem:[#allocation5 + $0x8] ss:$16 sps:$4 sm:$0xff]  }
  0x29   :  { %282 = vmatprep.subr.bf16.mxu0 %v854_v1  ;;  %395 = vmatprep.subr.bf16.mxu1 %v856_v2  ;;  %v860_v5 = vld [vmem:[#allocation5 + $0x24] ss:$16 sps:$4 sm:$0xff]   ;;  %v862_v6 = vld [vmem:[#allocation5 + $0x2c] ss:$16 sps:$4 sm:$0xff]   ;;  %v864_v7 = vld [vmem:[#allocation5 + $0x20] ss:$16 sps:$4 sm:$0xff]  }
  0x2a   :  { %283 = vmatpush1.bf16.msra.mxu0 %v858_v3  ;;  %396 = vmatpush1.bf16.msra.mxu1 %v859_v4  ;;  %v865_v8 = vld [vmem:[#allocation5 + $0x28] ss:$16 sps:$4 sm:$0xff]   ;;  %v866_v9 = vld [vmem:[#allocation5 + $0x44] ss:$16 sps:$4 sm:$0xff]   ;;  %v868_v10 = vld [vmem:[#allocation5 + $0x4c] ss:$16 sps:$4 sm:$0xff]  }
  0x2b   :  { %284 = vmatprep.subr.bf16.mxu0 %v860_v5  ;;  %397 = vmatprep.subr.bf16.mxu1 %v862_v6  ;;  %v870_v11 = vld [vmem:[#allocation5 + $0x40] ss:$16 sps:$4 sm:$0xff]   ;;  %v871_v12 = vld [vmem:[#allocation5 + $0x48] ss:$16 sps:$4 sm:$0xff]   ;;  %v872_v13 = vld [vmem:[#allocation5 + $0x64] ss:$16 sps:$4 sm:$0xff]  }
  0x2c   :  { %v874_v14 = vld [vmem:[#allocation5 + $0x6c] ss:$16 sps:$4 sm:$0xff]   ;;  %v876_v15 = vld [vmem:[#allocation5 + $0x60] ss:$16 sps:$4 sm:$0xff]   ;;  %v877_v16 = vld [vmem:[#allocation5 + $0x68] ss:$16 sps:$4 sm:$0xff]  }
  0x2d   :  { %v878_v17 = vld [vmem:[#allocation5 + $0x84] ss:$16 sps:$4 sm:$0xff]   ;;  %v880_v18 = vld [vmem:[#allocation5 + $0x8c] ss:$16 sps:$4 sm:$0xff]   ;;  %v882_v19 = vld [vmem:[#allocation5 + $0x80] ss:$16 sps:$4 sm:$0xff]  }
  0x2e   :  { %285 = vmatpush1.bf16.msra.mxu0 %v864_v7  ;;  %398 = vmatpush1.bf16.msra.mxu1 %v865_v8  ;;  %v883_v20 = vld [vmem:[#allocation5 + $0x88] ss:$16 sps:$4 sm:$0xff]   ;;  %v884_v21 = vld [vmem:[#allocation5 + $0xa4] ss:$16 sps:$4 sm:$0xff]   ;;  %v886_v22 = vld [vmem:[#allocation5 + $0xac] ss:$16 sps:$4 sm:$0xff]  }
  0x2f   :  { %286 = vmatprep.subr.bf16.mxu0 %v866_v9  ;;  %399 = vmatprep.subr.bf16.mxu1 %v868_v10  ;;  %v888_v23 = vld [vmem:[#allocation5 + $0xa0] ss:$16 sps:$4 sm:$0xff]   ;;  %v889_v24 = vld [vmem:[#allocation5 + $0xa8] ss:$16 sps:$4 sm:$0xff]   ;;  %v890_v25 = vld [vmem:[#allocation5 + $0xc4] ss:$16 sps:$4 sm:$0xff]  }
  0x30   :  { %v892_v26 = vld [vmem:[#allocation5 + $0xcc] ss:$16 sps:$4 sm:$0xff]   ;;  %v894_v27 = vld [vmem:[#allocation5 + $0xc0] ss:$16 sps:$4 sm:$0xff]   ;;  %v895_v28 = vld [vmem:[#allocation5 + $0xc8] ss:$16 sps:$4 sm:$0xff]  }
  0x31   :  { %v896_v29 = vld [vmem:[#allocation5 + $0xe4] ss:$16 sps:$4 sm:$0xff]   ;;  %v898_v30 = vld [vmem:[#allocation5 + $0xec] ss:$16 sps:$4 sm:$0xff]   ;;  %v900_v31 = vld [vmem:[#allocation5 + $0xe0] ss:$16 sps:$4 sm:$0xff]  }
  0x32   :  { %287 = vmatpush1.bf16.msra.mxu0 %v870_v11  ;;  %400 = vmatpush1.bf16.msra.mxu1 %v871_v12  ;;  %v901_v32 = vld [vmem:[#allocation5 + $0xe8] ss:$16 sps:$4 sm:$0xff]   ;;  %v44_v33 = vld [vmem:[#allocation2] sm:$0xff]  ;;  %v46_v36 = vld [vmem:[#allocation2 + $0x10] sm:$0xff]  ;;  %v103_v58 = vshrl.u32 %v102_v57, 7 }
  0x33   :  { %288 = vmatprep.subr.bf16.mxu0 %v872_v13  ;;  %401 = vmatprep.subr.bf16.mxu1 %v874_v14  ;;  %v60_v35 = vpack.c.bf16 %v45_v34, %v44_v33  ;;  %v47_v37 = vld [vmem:[#allocation2 + $0x18] sm:$0xff]  ;;  %v48_v39 = vld [vmem:[#allocation2 + $0x20] sm:$0xff]  ;;  %v49_v40 = vld [vmem:[#allocation2 + $0x28] sm:$0xff] }
  0x34   :  { %v61_v38 = vpack.c.bf16 %v47_v37, %v46_v36  ;;  %v62_v41 = vpack.c.bf16 %v49_v40, %v48_v39  ;;  %v50_v42 = vld [vmem:[#allocation2 + $0x30] sm:$0xff]  ;;  %v51_v43 = vld [vmem:[#allocation2 + $0x38] sm:$0xff]  ;;  %v52_v45 = vld [vmem:[#allocation2 + $0x40] sm:$0xff]  ;;  %v104_v59 = vsub.s32 0, %v103_v58  ;;  %v112_v60 = vsub.s32 2, %v103_v58 }
  0x35   :  { %v63_v44 = vpack.c.bf16 %v51_v43, %v50_v42  ;;  %v53_v46 = vld [vmem:[#allocation2 + $0x48] sm:$0xff]  ;;  %v54_v48 = vld [vmem:[#allocation2 + $0x50] sm:$0xff]  ;;  %v55_v49 = vld [vmem:[#allocation2 + $0x58] sm:$0xff]  ;;  %v108_v62 = vsub.s32 1, %v103_v58  ;;  %v116_v63 = vsub.s32 3, %v103_v58 }
  0x36   :  { %289 = vmatpush1.bf16.msra.mxu0 %v876_v15  ;;  %402 = vmatpush1.bf16.msra.mxu1 %v877_v16  ;;  %v64_v47 = vpack.c.bf16 %v53_v46, %v52_v45  ;;  %v65_v50 = vpack.c.bf16 %v55_v49, %v54_v48  ;;  %v56_v51 = vld [vmem:[#allocation2 + $0x60] sm:$0xff]  ;;  %v57_v52 = vld [vmem:[#allocation2 + $0x68] sm:$0xff]  ;;  %v58_v54 = vld [vmem:[#allocation2 + $0x70] sm:$0xff] }
  0x37   :  { %290 = vmatprep.subr.bf16.mxu0 %v878_v17  ;;  %403 = vmatprep.subr.bf16.mxu1 %v880_v18  ;;  %v66_v53 = vpack.c.bf16 %v57_v52, %v56_v51  ;;  %v59_v55 = vld [vmem:[#allocation2 + $0x78] sm:$0xff]  ;;  %v100_v61 = vld [vmem:[%s1137_s2] sm:$0xf]  ;;  %s981_s2 = smov [#allocation7]  }
  0x38   :  { %v67_v56 = vpack.c.bf16 %v59_v55, %v58_v54  ;;  %v1048_v1 = vrot.slane %v100_v61, %v104_v59  ;;  %v1050_v2 = vrot.slane %v100_v61, %v112_v60  ;;  %v1054_v3 = vrot.slane %v100_v61, %v116_v63  ;;  %s737_s13 = sshll.u32 %s981_s2, 4  ;;  %s738_s13 = int_to_ptr.vmem [resolvable:$true] %s737_s13 }
  0x39   :  { %s946_s14 = scalar_lea.vmem %s738_s13, 4096  ;;  %p951_p3 = scmp.lt.s32.totalorder %s738_s13, %s738_s13 }
  0x3a   :  { %291 = vmatpush1.bf16.msra.mxu0 %v882_v19  ;;  %404 = vmatpush1.bf16.msra.mxu1 %v883_v20  ;;  %p947_p2 = scmp.ne.s32.totalorder %s738_s13, %s946_s14  ;;  %p952_p4 = scmp.lt.s32.totalorder %s946_s14, %s946_s14 }
  0x3b   :  { %292 = vmatprep.subr.bf16.mxu0 %v884_v21  ;;  %405 = vmatprep.subr.bf16.mxu1 %v886_v22 }
  0x3c   :  { %p953_p5 = por %p952_p4, %p951_p3 }
  0x3e   :  { %293 = vmatpush1.bf16.msra.mxu0 %v888_v23  ;;  %406 = vmatpush1.bf16.msra.mxu1 %v889_v24  ;;  %p954_p6 = pnand %p953_p5, %p947_p2 }
  0x3f   :  { %294 = vmatprep.subr.bf16.mxu0 %v890_v25  ;;  %407 = vmatprep.subr.bf16.mxu1 %v892_v26 }
  0x42   :  { %295 = vmatpush1.bf16.msra.mxu0 %v894_v27  ;;  %408 = vmatpush1.bf16.msra.mxu1 %v895_v28 }
  0x43   :  { %296 = vmatprep.subr.bf16.mxu0 %v896_v29  ;;  %409 = vmatprep.subr.bf16.mxu1 %v898_v30 }
  0x46   :  { %297 = vmatpush1.bf16.msra.mxu0 %v900_v31  ;;  %410 = vmatpush1.bf16.msra.mxu1 %v901_v32 }
  0x49   :  { %315 = vmatmul.mubr.bf16.vlgmr.msra.gmra.mrb[0].mxu0 %v60_v35  ;;  %428 = vmatmul.mubr.bf16.vlgmr.msra.gmra.mrb[0].mxu1 %v60_v35 }
  0x4a   :  { %324 = vmatprep.mubr.bf16.mxu0 %v980_v0  ;;  %437 = vmatprep.mubr.bf16.mxu1 %v980_v0 }
  0x51   :  { %325 = vmatmul.mubr.bf16.gmra.mrb[4].mxu0 %v61_v38  ;;  %438 = vmatmul.mubr.bf16.gmra.mrb[4].mxu1 %v61_v38 }
  0x52   :  { %334 = vmatprep.mubr.bf16.mxu0 %v980_v0  ;;  %447 = vmatprep.mubr.bf16.mxu1 %v980_v0 }
  0x59   :  { %335 = vmatmul.mubr.bf16.gmra.mrb[8].mxu0 %v62_v41  ;;  %448 = vmatmul.mubr.bf16.gmra.mrb[8].mxu1 %v62_v41 }
  0x5a   :  { %344 = vmatprep.mubr.bf16.mxu0 %v980_v0  ;;  %457 = vmatprep.mubr.bf16.mxu1 %v980_v0 }
  0x61   :  { %345 = vmatmul.mubr.bf16.gmra.mrb[12].mxu0 %v63_v44  ;;  %458 = vmatmul.mubr.bf16.gmra.mrb[12].mxu1 %v63_v44 }
  0x62   :  { %354 = vmatprep.mubr.bf16.mxu0 %v980_v0  ;;  %467 = vmatprep.mubr.bf16.mxu1 %v980_v0 }
  0x69   :  { %355 = vmatmul.mubr.bf16.gmra.mrb[16].mxu0 %v64_v47  ;;  %468 = vmatmul.mubr.bf16.gmra.mrb[16].mxu1 %v64_v47 }
  0x6a   :  { %364 = vmatprep.mubr.bf16.mxu0 %v980_v0  ;;  %477 = vmatprep.mubr.bf16.mxu1 %v980_v0 }
  0x71   :  { %365 = vmatmul.mubr.bf16.gmra.mrb[20].mxu0 %v65_v50  ;;  %478 = vmatmul.mubr.bf16.gmra.mrb[20].mxu1 %v65_v50 }
  0x72   :  { %374 = vmatprep.mubr.bf16.mxu0 %v980_v0  ;;  %487 = vmatprep.mubr.bf16.mxu1 %v980_v0 }
  0x79   :  { %375 = vmatmul.mubr.bf16.gmra.mrb[24].mxu0 %v66_v53  ;;  %488 = vmatmul.mubr.bf16.gmra.mrb[24].mxu1 %v66_v53 }
  0x7a   :  { %384 = vmatprep.mubr.bf16.mxu0 %v980_v0  ;;  %497 = vmatprep.mubr.bf16.mxu1 %v980_v0  ;;  %v1052_v0 = vrot.slane %v100_v61, %v108_v62 }
  0x81   :  { %385 = vmatmul.mubr.bf16.gmra.mrb[28].mxu0 %v67_v56  ;;  %498 = vmatmul.mubr.bf16.gmra.mrb[28].mxu1 %v67_v56 }
 0x11c   :  { %v316_v4 = vpop.f32.mrb[0].mxu0  ;;  %v429_v5 = vpop.f32.mrb[0].mxu1 }
 0x11d   :  { %v317_v6 = vadd.f32 %v316_v4, %v1048_v1  ;;  %v430_v7 = vadd.f32 %v429_v5, %v1050_v2  ;;  %v318_v8 = vpop.f32.mrb[1].mxu0  ;;  %v431_v9 = vpop.f32.mrb[1].mxu1 }
 0x11e   :  { %v319_v10 = vadd.f32 %v318_v8, %v1052_v0  ;;  %v432_v11 = vadd.f32 %v431_v9, %v1054_v3  ;;  %v320_v12 = vpop.f32.mrb[2].mxu0  ;;  %v433_v13 = vpop.f32.mrb[2].mxu1 }
 0x11f   :  { %v321_v14 = vadd.f32 %v320_v12, %v1048_v1  ;;  %v434_v15 = vadd.f32 %v433_v13, %v1050_v2  ;;  %v322_v16 = vpop.f32.mrb[3].mxu0  ;;  %v435_v17 = vpop.f32.mrb[3].mxu1 }
 0x120   :  { %v814_v18 = vpack.c.bf16 %v319_v10, %v317_v6  ;;  %v815_v19 = vpack.c.bf16 %v432_v11, %v430_v7  ;;  %v323_v20 = vadd.f32 %v322_v16, %v1052_v0  ;;  %v436_v21 = vadd.f32 %v435_v17, %v1054_v3 }
 0x122   :  { %700 = vst [vmem:[#allocation7] sm:$0xff] %v814_v18  ;;  %701 = vst [vmem:[#allocation7 + $0x8] sm:$0xff] %v815_v19  ;;  %v816_v22 = vpack.c.bf16 %v323_v20, %v321_v14  ;;  %v817_v23 = vpack.c.bf16 %v436_v21, %v434_v15 }
 0x124   :  { %702 = vst [vmem:[#allocation7 + $0x10] sm:$0xff] %v816_v22  ;;  %703 = vst [vmem:[#allocation7 + $0x18] sm:$0xff] %v817_v23  ;;  %v326_v24 = vpop.f32.mrb[4].mxu0  ;;  %v439_v25 = vpop.f32.mrb[4].mxu1 }
 0x125   :  { %v327_v26 = vadd.f32 %v326_v24, %v1048_v1  ;;  %v440_v27 = vadd.f32 %v439_v25, %v1050_v2  ;;  %v328_v28 = vpop.f32.mrb[5].mxu0  ;;  %v441_v29 = vpop.f32.mrb[5].mxu1 }
 0x126   :  { %v329_v30 = vadd.f32 %v328_v28, %v1052_v0  ;;  %v442_v31 = vadd.f32 %v441_v29, %v1054_v3  ;;  %v330_v32 = vpop.f32.mrb[6].mxu0  ;;  %v443_v33 = vpop.f32.mrb[6].mxu1 }
 0x127   :  { %v331_v34 = vadd.f32 %v330_v32, %v1048_v1  ;;  %v444_v35 = vadd.f32 %v443_v33, %v1050_v2  ;;  %v332_v36 = vpop.f32.mrb[7].mxu0  ;;  %v445_v37 = vpop.f32.mrb[7].mxu1 }
 0x128   :  { %v818_v38 = vpack.c.bf16 %v329_v30, %v327_v26  ;;  %v819_v39 = vpack.c.bf16 %v442_v31, %v440_v27  ;;  %v333_v40 = vadd.f32 %v332_v36, %v1052_v0  ;;  %v446_v41 = vadd.f32 %v445_v37, %v1054_v3 }
 0x12a   :  { %704 = vst [vmem:[#allocation7 + $0x20] sm:$0xff] %v818_v38  ;;  %705 = vst [vmem:[#allocation7 + $0x28] sm:$0xff] %v819_v39  ;;  %v820_v42 = vpack.c.bf16 %v333_v40, %v331_v34  ;;  %v821_v43 = vpack.c.bf16 %v446_v41, %v444_v35 }
 0x12c   :  { %706 = vst [vmem:[#allocation7 + $0x30] sm:$0xff] %v820_v42  ;;  %707 = vst [vmem:[#allocation7 + $0x38] sm:$0xff] %v821_v43  ;;  %v336_v44 = vpop.f32.mrb[8].mxu0  ;;  %v449_v45 = vpop.f32.mrb[8].mxu1 }
 0x12d   :  { %v337_v46 = vadd.f32 %v336_v44, %v1048_v1  ;;  %v450_v47 = vadd.f32 %v449_v45, %v1050_v2  ;;  %v338_v48 = vpop.f32.mrb[9].mxu0  ;;  %v451_v49 = vpop.f32.mrb[9].mxu1 }
 0x12e   :  { %v339_v50 = vadd.f32 %v338_v48, %v1052_v0  ;;  %v452_v51 = vadd.f32 %v451_v49, %v1054_v3  ;;  %v340_v52 = vpop.f32.mrb[10].mxu0  ;;  %v453_v53 = vpop.f32.mrb[10].mxu1 }
 0x12f   :  { %v341_v54 = vadd.f32 %v340_v52, %v1048_v1  ;;  %v454_v55 = vadd.f32 %v453_v53, %v1050_v2  ;;  %v342_v56 = vpop.f32.mrb[11].mxu0  ;;  %v455_v57 = vpop.f32.mrb[11].mxu1 }
 0x130   :  { %v822_v58 = vpack.c.bf16 %v339_v50, %v337_v46  ;;  %v823_v59 = vpack.c.bf16 %v452_v51, %v450_v47  ;;  %v343_v60 = vadd.f32 %v342_v56, %v1052_v0  ;;  %v456_v61 = vadd.f32 %v455_v57, %v1054_v3 }
 0x132   :  { %708 = vst [vmem:[#allocation7 + $0x40] sm:$0xff] %v822_v58  ;;  %709 = vst [vmem:[#allocation7 + $0x48] sm:$0xff] %v823_v59  ;;  %v824_v62 = vpack.c.bf16 %v343_v60, %v341_v54  ;;  %v825_v63 = vpack.c.bf16 %v456_v61, %v454_v55 }
 0x134   :  { %710 = vst [vmem:[#allocation7 + $0x50] sm:$0xff] %v824_v62  ;;  %711 = vst [vmem:[#allocation7 + $0x58] sm:$0xff] %v825_v63  ;;  %v346_v4 = vpop.f32.mrb[12].mxu0  ;;  %v459_v5 = vpop.f32.mrb[12].mxu1 }
 0x135   :  { %v347_v6 = vadd.f32 %v346_v4, %v1048_v1  ;;  %v460_v7 = vadd.f32 %v459_v5, %v1050_v2  ;;  %v348_v8 = vpop.f32.mrb[13].mxu0  ;;  %v461_v9 = vpop.f32.mrb[13].mxu1 }
 0x136   :  { %v349_v10 = vadd.f32 %v348_v8, %v1052_v0  ;;  %v462_v11 = vadd.f32 %v461_v9, %v1054_v3  ;;  %v350_v12 = vpop.f32.mrb[14].mxu0  ;;  %v463_v13 = vpop.f32.mrb[14].mxu1 }
 0x137   :  { %v351_v14 = vadd.f32 %v350_v12, %v1048_v1  ;;  %v464_v15 = vadd.f32 %v463_v13, %v1050_v2  ;;  %v352_v16 = vpop.f32.mrb[15].mxu0  ;;  %v465_v17 = vpop.f32.mrb[15].mxu1 }
 0x138   :  { %v826_v18 = vpack.c.bf16 %v349_v10, %v347_v6  ;;  %v827_v19 = vpack.c.bf16 %v462_v11, %v460_v7  ;;  %v353_v20 = vadd.f32 %v352_v16, %v1052_v0  ;;  %v466_v21 = vadd.f32 %v465_v17, %v1054_v3 }
 0x13a   :  { %712 = vst [vmem:[#allocation7 + $0x60] sm:$0xff] %v826_v18  ;;  %713 = vst [vmem:[#allocation7 + $0x68] sm:$0xff] %v827_v19  ;;  %v828_v22 = vpack.c.bf16 %v353_v20, %v351_v14  ;;  %v829_v23 = vpack.c.bf16 %v466_v21, %v464_v15 }
 0x13c   :  { %714 = vst [vmem:[#allocation7 + $0x70] sm:$0xff] %v828_v22  ;;  %715 = vst [vmem:[#allocation7 + $0x78] sm:$0xff] %v829_v23  ;;  %v356_v24 = vpop.f32.mrb[16].mxu0  ;;  %v469_v25 = vpop.f32.mrb[16].mxu1 }
 0x13d   :  { %v357_v26 = vadd.f32 %v356_v24, %v1048_v1  ;;  %v470_v27 = vadd.f32 %v469_v25, %v1050_v2  ;;  %v358_v28 = vpop.f32.mrb[17].mxu0  ;;  %v471_v29 = vpop.f32.mrb[17].mxu1 }
 0x13e   :  { %v359_v30 = vadd.f32 %v358_v28, %v1052_v0  ;;  %v472_v31 = vadd.f32 %v471_v29, %v1054_v3  ;;  %v360_v32 = vpop.f32.mrb[18].mxu0  ;;  %v473_v33 = vpop.f32.mrb[18].mxu1 }
 0x13f   :  { %v361_v34 = vadd.f32 %v360_v32, %v1048_v1  ;;  %v474_v35 = vadd.f32 %v473_v33, %v1050_v2  ;;  %v362_v36 = vpop.f32.mrb[19].mxu0  ;;  %v475_v37 = vpop.f32.mrb[19].mxu1 }
 0x140   :  { %v830_v38 = vpack.c.bf16 %v359_v30, %v357_v26  ;;  %v831_v39 = vpack.c.bf16 %v472_v31, %v470_v27  ;;  %v363_v40 = vadd.f32 %v362_v36, %v1052_v0  ;;  %v476_v41 = vadd.f32 %v475_v37, %v1054_v3 }
 0x142   :  { %716 = vst [vmem:[#allocation7 + $0x80] sm:$0xff] %v830_v38  ;;  %717 = vst [vmem:[#allocation7 + $0x88] sm:$0xff] %v831_v39  ;;  %v832_v42 = vpack.c.bf16 %v363_v40, %v361_v34  ;;  %v833_v43 = vpack.c.bf16 %v476_v41, %v474_v35 }
 0x144   :  { %718 = vst [vmem:[#allocation7 + $0x90] sm:$0xff] %v832_v42  ;;  %719 = vst [vmem:[#allocation7 + $0x98] sm:$0xff] %v833_v43  ;;  %v366_v44 = vpop.f32.mrb[20].mxu0  ;;  %v479_v45 = vpop.f32.mrb[20].mxu1 }
 0x145   :  { %v367_v46 = vadd.f32 %v366_v44, %v1048_v1  ;;  %v480_v47 = vadd.f32 %v479_v45, %v1050_v2  ;;  %v368_v48 = vpop.f32.mrb[21].mxu0  ;;  %v481_v49 = vpop.f32.mrb[21].mxu1 }
 0x146   :  { %v369_v50 = vadd.f32 %v368_v48, %v1052_v0  ;;  %v482_v51 = vadd.f32 %v481_v49, %v1054_v3  ;;  %v370_v52 = vpop.f32.mrb[22].mxu0  ;;  %v483_v53 = vpop.f32.mrb[22].mxu1 }
 0x147   :  { %v371_v54 = vadd.f32 %v370_v52, %v1048_v1  ;;  %v484_v55 = vadd.f32 %v483_v53, %v1050_v2  ;;  %v372_v56 = vpop.f32.mrb[23].mxu0  ;;  %v485_v57 = vpop.f32.mrb[23].mxu1 }
 0x148   :  { %v834_v58 = vpack.c.bf16 %v369_v50, %v367_v46  ;;  %v835_v59 = vpack.c.bf16 %v482_v51, %v480_v47  ;;  %v373_v60 = vadd.f32 %v372_v56, %v1052_v0  ;;  %v486_v61 = vadd.f32 %v485_v57, %v1054_v3 }
 0x14a   :  { %720 = vst [vmem:[#allocation7 + $0xa0] sm:$0xff] %v834_v58  ;;  %721 = vst [vmem:[#allocation7 + $0xa8] sm:$0xff] %v835_v59  ;;  %v836_v62 = vpack.c.bf16 %v373_v60, %v371_v54  ;;  %v837_v63 = vpack.c.bf16 %v486_v61, %v484_v55 }
 0x14c   :  { %722 = vst [vmem:[#allocation7 + $0xb0] sm:$0xff] %v836_v62  ;;  %723 = vst [vmem:[#allocation7 + $0xb8] sm:$0xff] %v837_v63  ;;  %v376_v4 = vpop.f32.mrb[24].mxu0  ;;  %v489_v5 = vpop.f32.mrb[24].mxu1 }
 0x14d   :  { %v377_v6 = vadd.f32 %v376_v4, %v1048_v1  ;;  %v490_v7 = vadd.f32 %v489_v5, %v1050_v2  ;;  %v378_v8 = vpop.f32.mrb[25].mxu0  ;;  %v491_v9 = vpop.f32.mrb[25].mxu1 }
 0x14e   :  { %v379_v10 = vadd.f32 %v378_v8, %v1052_v0  ;;  %v492_v11 = vadd.f32 %v491_v9, %v1054_v3  ;;  %v380_v12 = vpop.f32.mrb[26].mxu0  ;;  %v493_v13 = vpop.f32.mrb[26].mxu1 }
 0x14f   :  { %v381_v14 = vadd.f32 %v380_v12, %v1048_v1  ;;  %v494_v15 = vadd.f32 %v493_v13, %v1050_v2  ;;  %v382_v16 = vpop.f32.mrb[27].mxu0  ;;  %v495_v17 = vpop.f32.mrb[27].mxu1 }
 0x150   :  { %v838_v18 = vpack.c.bf16 %v379_v10, %v377_v6  ;;  %v839_v19 = vpack.c.bf16 %v492_v11, %v490_v7  ;;  %v383_v20 = vadd.f32 %v382_v16, %v1052_v0  ;;  %v496_v21 = vadd.f32 %v495_v17, %v1054_v3 }
 0x152   :  { %724 = vst [vmem:[#allocation7 + $0xc0] sm:$0xff] %v838_v18  ;;  %725 = vst [vmem:[#allocation7 + $0xc8] sm:$0xff] %v839_v19  ;;  %v840_v22 = vpack.c.bf16 %v383_v20, %v381_v14  ;;  %v841_v23 = vpack.c.bf16 %v496_v21, %v494_v15 }
 0x154   :  { %726 = vst [vmem:[#allocation7 + $0xd0] sm:$0xff] %v840_v22  ;;  %727 = vst [vmem:[#allocation7 + $0xd8] sm:$0xff] %v841_v23  ;;  %v386_v24 = vpop.f32.mrb[28].mxu0  ;;  %v499_v25 = vpop.f32.mrb[28].mxu1 }
 0x155   :  { %v387_v26 = vadd.f32 %v386_v24, %v1048_v1  ;;  %v500_v27 = vadd.f32 %v499_v25, %v1050_v2  ;;  %v388_v28 = vpop.f32.mrb[29].mxu0  ;;  %v501_v29 = vpop.f32.mrb[29].mxu1 }
 0x156   :  { %v389_v30 = vadd.f32 %v388_v28, %v1052_v0  ;;  %v502_v31 = vadd.f32 %v501_v29, %v1054_v3  ;;  %v390_v32 = vpop.f32.mrb[30].mxu0  ;;  %v503_v33 = vpop.f32.mrb[30].mxu1 }
 0x157   :  { %v391_v34 = vadd.f32 %v390_v32, %v1048_v1  ;;  %v504_v35 = vadd.f32 %v503_v33, %v1050_v2  ;;  %v392_v36 = vpop.f32.mrb[31].mxu0  ;;  %v505_v37 = vpop.f32.mrb[31].mxu1 }
 0x158   :  { %v842_v38 = vpack.c.bf16 %v389_v30, %v387_v26  ;;  %v843_v39 = vpack.c.bf16 %v502_v31, %v500_v27  ;;  %v393_v40 = vadd.f32 %v392_v36, %v1052_v0  ;;  %v506_v41 = vadd.f32 %v505_v37, %v1054_v3 }
 0x15a   :  { %728 = vst [vmem:[#allocation7 + $0xe0] sm:$0xff] %v842_v38  ;;  %729 = vst [vmem:[#allocation7 + $0xe8] sm:$0xff] %v843_v39  ;;  %v844_v42 = vpack.c.bf16 %v393_v40, %v391_v34  ;;  %v845_v43 = vpack.c.bf16 %v506_v41, %v504_v35 }
 0x15c   :  { %730 = vst [vmem:[#allocation7 + $0xf0] sm:$0xff] %v844_v42  ;;  %731 = vst [vmem:[#allocation7 + $0xf8] sm:$0xff] %v845_v43 }
 0x15d   :  { %957 = shalt.err (!%p954_p6)
}
 0x15e   :  { %s958_s17 = scalar_lea.hbm %s1138_s3, 4096 }
 0x15f   :  { %p959_p7 = scmp.ne.s32.totalorder %s1138_s3, %s958_s17  ;;  %p962_p8 = scmp.lt.u32.totalorder %s958_s17, %s1138_s3 }
 0x161   :  { %p964_p9 = pnand %p962_p8, %p959_p7 }
 0x163   :  { %967 = shalt.err (!%p964_p9)
}
 0x164   :  { %743 = dma.vmem_to_hbm [thread:$0]  %s738_s13, 4096, %s1138_s3, [#allocation4], %s978_s0, %s978_s0, %s979_s9  }
 0x165   :  { %972 = dma.done.wait [#allocation4], 4096  }
 0x166   :  { %973 = vsyncadd [#allocation4], 4294963200 }
 0x167   :  { %747 = vsyncpa [#allocation3], 1 }
 0x168   :  { %748 = vsyncpa [#allocation6], 1 }
 0x169   :  { %749 = vsyncpa [#allocation4], 1 }

</bundles_post_ra>
